<compile_context>
chip_gen: v6e
topology: v6e:2x2x1
jax: 0.10.0
libtpu: 0.0.40
codegen_flags: <defaults>
</compile_context>

<pallas_src>
import functools

import jax
import jax.numpy as jnp
from jax import lax
from jax.experimental import pallas as pl
from jax.experimental.pallas import tpu as pltpu

_IMAGENET_MEAN = (0.485, 0.456, 0.406)
_IMAGENET_STD = (0.229, 0.224, 0.225)


# --------------------------------------------------------------------------
# Helpers
# --------------------------------------------------------------------------
def _lane_tile(rows, lanes, itemsize, target_bytes=2 << 20):
    """Pick a lane-tile (multiple of 128) so one (rows, tile) block ~2 MiB."""
    if lanes < 128:
        return int(lanes)                      # full-dim block (tiny spatial)
    t = (target_bytes // max(rows * itemsize, 1)) // 128 * 128
    t = max(128, t)
    t = min(t, ((lanes + 127) // 128) * 128)   # never exceed rounded-up extent
    return int(t)


# --------------------------------------------------------------------------
# Kernel 1: tiled per-row sum / sum-of-squares reduction over the lane axis.
#   x2: (R, L)  ->  partial row_sum (P, R, 1), partial row_sumsq (P, R, 1)
# Grid = (P cores "parallel", K lane-blocks "arbitrary").  Output blocks are
# indexed only by p, so they stay VMEM-resident across the reduction axis
# (accumulator pattern).  Lanes past L (partial tail or duplicated clamped
# blocks) are masked to zero, so over-coverage P*K*t >= L is always correct.
# --------------------------------------------------------------------------
def _stats_kernel(x_ref, sum_ref, ssq_ref, *, lane_tile, k_blocks, total_lanes):
    p = pl.program_id(0)
    k = pl.program_id(1)

    @pl.when(k == 0)
    def _():
        sum_ref[...] = jnp.zeros_like(sum_ref)
        ssq_ref[...] = jnp.zeros_like(ssq_ref)

    x = x_ref[...].astype(jnp.float32)
    j = p * k_blocks + k                                   # global lane block
    lane = lax.broadcasted_iota(jnp.int32, x.shape, 1) + j * lane_tile
    x = jnp.where(lane < total_lanes, x, 0.0)
    sum_ref[...] += jnp.sum(x, axis=1, keepdims=True)[None]
    ssq_ref[...] += jnp.sum(x * x, axis=1, keepdims=True)[None]


def channel_row_partials_pallas(x2):
    """x2: (R, L) -> (row_sum (R, 1), row_sumsq (R, 1)) in float32."""
    R, L = x2.shape
    t = _lane_tile(R, L, jnp.dtype(x2.dtype).itemsize)
    nblocks = (L + t - 1) // t
    P = 2 if nblocks >= 2 else 1                 # megacore split on v7x
    Kp = (nblocks + P - 1) // P
    kernel = functools.partial(
        _stats_kernel, lane_tile=t, k_blocks=Kp, total_lanes=L)
    sums, ssqs = pl.pallas_call(
        kernel,
        out_shape=(
            jax.ShapeDtypeStruct((P, R, 1), jnp.float32),
            jax.ShapeDtypeStruct((P, R, 1), jnp.float32),
        ),
        grid=(P, Kp),
        in_specs=[pl.BlockSpec((R, t), lambda p, k: (0, p * Kp + k))],
        out_specs=(
            pl.BlockSpec((1, R, 1), lambda p, k: (p, 0, 0)),
            pl.BlockSpec((1, R, 1), lambda p, k: (p, 0, 0)),
        ),
        compiler_params=pltpu.CompilerParams(
            dimension_semantics=("parallel", "arbitrary")),
    )(x2)
    # tiny host-graph combine of per-core partials -> (R, 1)
    return sums.sum(axis=0), ssqs.sum(axis=0)


# --------------------------------------------------------------------------
# Kernel 2: per-row fused multiply-add  out[r, :] = x[r, :] * scale[r] + shift[r]
# --------------------------------------------------------------------------
def _affine_kernel(x_ref, scale_ref, shift_ref, o_ref):
    x = x_ref[...].astype(jnp.float32)
    y = x * scale_ref[...] + shift_ref[...]      # (R,1) broadcasts over lanes
    o_ref[...] = y.astype(o_ref.dtype)


def row_affine_pallas(x2, scale_rows, shift_rows):
    """x2: (R, L); scale_rows, shift_rows: (R, 1) float32 -> (R, L)."""
    R, L = x2.shape
    t = _lane_tile(R, L, jnp.dtype(x2.dtype).itemsize)
    grid = (pl.cdiv(L, t),)
    return pl.pallas_call(
        _affine_kernel,
        out_shape=jax.ShapeDtypeStruct((R, L), x2.dtype),
        grid=grid,
        in_specs=[
            pl.BlockSpec((R, t), lambda j: (0, j)),
            pl.BlockSpec((R, 1), lambda j: (0, 0)),
            pl.BlockSpec((R, 1), lambda j: (0, 0)),
        ],
        out_specs=pl.BlockSpec((R, t), lambda j: (0, j)),
        compiler_params=pltpu.CompilerParams(
            dimension_semantics=("parallel",)),
    )(x2, scale_rows, shift_rows)


# --------------------------------------------------------------------------
# Kernel 3 (compute_stats fast path, small inputs): single pass that loads the
# tensor once, computes per-channel mean / unbiased std in-kernel, and writes
# the normalized output from the same VMEM-resident block.
# --------------------------------------------------------------------------
def _fused_stats_affine_kernel(x_ref, o_ref, *, rows, total_n):
    x = x_ref[...].astype(jnp.float32)
    row_s = jnp.sum(x, axis=1, keepdims=True)        # (R, 1)
    row_ss = jnp.sum(x * x, axis=1, keepdims=True)   # (R, 1)
    ch = lax.broadcasted_iota(jnp.int32, (rows, 1), 0) % 3
    n = jnp.float32(total_n)
    scale_rows = jnp.zeros((rows, 1), jnp.float32)
    shift_rows = jnp.zeros((rows, 1), jnp.float32)
    for c in range(3):                                # static 3-channel loop
        m = ch == c
        s_c = jnp.sum(jnp.where(m, row_s, 0.0))
        ss_c = jnp.sum(jnp.where(m, row_ss, 0.0))
        mean_c = s_c / n
        # unbiased variance (matches torch.Tensor.std(1))
        var_c = (ss_c - n * mean_c * mean_c) / (n - 1.0)
        std_c = jnp.sqrt(jnp.maximum(var_c, 0.0))
        scale_rows = jnp.where(m, std_c / _IMAGENET_STD[c], scale_rows)
        shift_rows = jnp.where(
            m, (mean_c - _IMAGENET_MEAN[c]) / _IMAGENET_STD[c], shift_rows)
    o_ref[...] = (x * scale_rows + shift_rows).astype(o_ref.dtype)


def fused_stats_affine_pallas(x2):
    R, L = x2.shape
    kernel = functools.partial(
        _fused_stats_affine_kernel, rows=R, total_n=(R // 3) * L)
    return pl.pallas_call(
        kernel,
        out_shape=jax.ShapeDtypeStruct((R, L), x2.dtype),
        grid=(1,),
        in_specs=[pl.BlockSpec((R, L), lambda i: (0, 0))],
        out_specs=pl.BlockSpec((R, L), lambda i: (0, 0)),
    )(x2)


# --------------------------------------------------------------------------
# Wrapper reproducing Preprocess.forward
# --------------------------------------------------------------------------
def preprocess(x, pre_norm_mean=None, pre_norm_std=None, compute_stats=False,
               fuse_threshold_bytes=2 * 1024 * 1024):
    """x: [N, 3, H, W].

    - compute_stats=True : pre_normalization set, no .mean/.std attrs ->
                           per-channel mean/std computed from the input.
    - pre_norm_mean/std  : pre_normalization with explicit .mean/.std.
    - neither            : pre_normalization is None.
    """
    N, C, H, W = x.shape
    assert C == 3
    R, L = N * C, H * W
    x2 = x.reshape(R, L)   # free view of contiguous NCHW (no data movement)

    inet_mean = jnp.asarray(_IMAGENET_MEAN, jnp.float32)
    inet_std = jnp.asarray(_IMAGENET_STD, jnp.float32)

    if compute_stats:
        nbytes = R * L * jnp.dtype(x.dtype).itemsize
        if nbytes <= fuse_threshold_bytes:
            # single-pass fused stats + normalize (1 HBM read + 1 write)
            return fused_stats_affine_pallas(x2).reshape(N, C, H, W)
        # large input: tiled reduction, then tiled affine (2 reads + 1 write)
        # NOTE: variance via E[x^2]-mean^2 in f32; fine for [0,1] image data.
        row_s, row_ss = channel_row_partials_pallas(x2)
        s = row_s.reshape(N, 3).sum(axis=0)
        ss = row_ss.reshape(N, 3).sum(axis=0)
        n = jnp.float32(N * H * W)
        mean = s / n
        var = (ss - n * mean * mean) / (n - 1.0)
        std = jnp.sqrt(jnp.maximum(var, 0.0))
        scale3 = std / inet_std
        shift3 = (mean - inet_mean) / inet_std
    elif pre_norm_mean is not None:
        mean = jnp.asarray(pre_norm_mean, jnp.float32).reshape(3)
        std = jnp.asarray(pre_norm_std, jnp.float32).reshape(3)
        scale3 = std / inet_std
        shift3 = (mean - inet_mean) / inet_std
    else:
        scale3 = 1.0 / inet_std
        shift3 = -inet_mean / inet_std

    # per-row (n, c) scale/shift:  row = n*3 + c  ->  channel = row % 3
    scale_rows = jnp.tile(scale3, (N,)).reshape(R, 1)
    shift_rows = jnp.tile(shift3, (N,)).reshape(R, 1)
    out2 = row_affine_pallas(x2, scale_rows, shift_rows)
    return out2.reshape(N, C, H, W)


# --------------------------------------------------------------------------
# Pure-JAX reference (mirrors the PyTorch forward literally)
# --------------------------------------------------------------------------
def preprocess_ref(x, pre_norm_mean=None, pre_norm_std=None,
                   compute_stats=False):
    r = x[:, 0:1]
    g = x[:, 1:2]
    b = x[:, 2:3]
    if compute_stats or pre_norm_mean is not None:
        if pre_norm_mean is not None:
            _mean = jnp.asarray(pre_norm_mean, jnp.float32)
            _std = jnp.asarray(pre_norm_std, jnp.float32)
        else:
            flat = jnp.transpose(x, (1, 0, 2, 3)).reshape(3, -1)
            _mean = flat.mean(axis=1)
            _std = flat.std(axis=1, ddof=1)
        r = r * _std[0] + _mean[0]
        g = g * _std[1] + _mean[1]
        b = b * _std[2] + _mean[2]
    r = (r - 0.485) / 0.229
    g = (g - 0.456) / 0.224
    b = (b - 0.406) / 0.225
    return jnp.concatenate([r, g, b], axis=1)


if __name__ == "__main__":
    key = jax.random.PRNGKey(0)
    k1, k2, k3 = jax.random.split(key, 3)
    x_small = jax.random.uniform(k1, (2, 3, 16, 16), dtype=jnp.float32)
    # spatial size whose flattened lane count (480) is NOT a multiple of 128,
    # to exercise partial tail blocks + the masked tiled-stats path.
    x_odd = jax.random.uniform(k2, (2, 3, 20, 24), dtype=jnp.float32)
    # large enough to take the tiled-reduction path with P=2 core partials
    # and a partial final lane block in the affine pass.
    x_large = jax.random.uniform(k3, (2, 3, 128, 1024), dtype=jnp.float32)

    pn_mean = jnp.array([0.10, 0.20, 0.30], jnp.float32)
    pn_std = jnp.array([1.10, 1.20, 1.30], jnp.float32)

    run = jax.jit(preprocess,
                  static_argnames=("compute_stats", "fuse_threshold_bytes"))

    checks = []

    # 1) pre_normalization is None
    out = jax.block_until_ready(run(x_small))
    checks.append(jnp.allclose(out, preprocess_ref(x_small),
                               atol=1e-5, rtol=1e-5))

    # 2) pre_normalization with explicit mean/std attributes
    out = jax.block_until_ready(run(x_small, pn_mean, pn_std))
    checks.append(jnp.allclose(out, preprocess_ref(x_small, pn_mean, pn_std),
                               atol=1e-5, rtol=1e-5))

    # 3) stats computed from the input (fused single-pass kernel path)
    out = jax.block_until_ready(run(x_small, compute_stats=True))
    checks.append(jnp.allclose(out, preprocess_ref(x_small, compute_stats=True),
                               atol=1e-4, rtol=1e-4))

    # 4) stats from input, forced tiled-reduction path, non-128-multiple lanes
    out = jax.block_until_ready(run(x_odd, compute_stats=True,
                                    fuse_threshold_bytes=0))
    checks.append(jnp.allclose(out, preprocess_ref(x_odd, compute_stats=True),
                               atol=1e-4, rtol=1e-4))

    # 5) affine-only path with a partial (non-multiple-of-128) lane tail
    out = jax.block_until_ready(run(x_odd))
    checks.append(jnp.allclose(out, preprocess_ref(x_odd),
                               atol=1e-5, rtol=1e-5))

    # 6) stats from input, large tensor -> P=2 partials + multi-block affine
    out = jax.block_until_ready(run(x_large, compute_stats=True))
    checks.append(jnp.allclose(out, preprocess_ref(x_large, compute_stats=True),
                               atol=1e-4, rtol=1e-4))

    # 7) affine-only path on the large tensor (multi-block, partial tail)
    out = jax.block_until_ready(run(x_large, pn_mean, pn_std))
    checks.append(jnp.allclose(out, preprocess_ref(x_large, pn_mean, pn_std),
                               atol=1e-5, rtol=1e-5))

    if all(bool(c) for c in checks):
        print("KERNEL_OK")
    else:
        print("KERNEL_MISMATCH")
</pallas_src>

<mosaic_0001>
module attributes {stable_mosaic.version = 11 : i64} {
  func.func @_affine_kernel(%arg0: i32, %arg1: memref<6x256xf32, #tpu.memory_space<vmem>>, %arg2: memref<6x1xf32, #tpu.memory_space<vmem>>, %arg3: memref<6x1xf32, #tpu.memory_space<vmem>>, %arg4: memref<6x256xf32, #tpu.memory_space<vmem>>) attributes {dimension_semantics = [#tpu.dimension_semantics<parallel>], iteration_bounds = array<i64: 1>, scalar_prefetch = 0 : i64, scratch_operands = 0 : i64, tpu.core_type = #tpu.core_type<tc>, window_params = [{transform_indices = @transform_0, window_bounds = array<i64: 6, 256>}, {pipeline_mode = #tpu.pipeline_mode<synchronous>, transform_indices = @transform_1, window_bounds = array<i64: 6, 1>}, {pipeline_mode = #tpu.pipeline_mode<synchronous>, transform_indices = @transform_2, window_bounds = array<i64: 6, 1>}, {transform_indices = @transform_3, window_bounds = array<i64: 6, 256>}]} {
    %c0 = arith.constant 0 : index
    %c0_0 = arith.constant 0 : index
    %0 = vector.load %arg1[%c0, %c0_0] : memref<6x256xf32, #tpu.memory_space<vmem>>, vector<6x256xf32>
    %c0_1 = arith.constant 0 : index
    %c0_2 = arith.constant 0 : index
    %1 = vector.load %arg2[%c0_1, %c0_2] : memref<6x1xf32, #tpu.memory_space<vmem>>, vector<6x1xf32>
    %2 = vector.broadcast %1 : vector<6x1xf32> to vector<6x256xf32>
    %3 = arith.mulf %0, %2 : vector<6x256xf32>
    %c0_3 = arith.constant 0 : index
    %c0_4 = arith.constant 0 : index
    %4 = vector.load %arg3[%c0_3, %c0_4] : memref<6x1xf32, #tpu.memory_space<vmem>>, vector<6x1xf32>
    %5 = vector.broadcast %4 : vector<6x1xf32> to vector<6x256xf32>
    %6 = arith.addf %3, %5 : vector<6x256xf32>
    %c0_5 = arith.constant 0 : index
    %c0_6 = arith.constant 0 : index
    %7 = vector.load %arg4[%c0_5, %c0_6] : memref<6x256xf32, #tpu.memory_space<vmem>>, vector<6x256xf32>
    tpu.vector_store %arg4[%c0_5, %c0_6], %6 {strides = array<i32>} : memref<6x256xf32, #tpu.memory_space<vmem>>, vector<6x256xf32>,
    return
  }
  func.func @transform_0(%arg0: i32) -> (i32, i32) {
    %c0_i32 = arith.constant 0 : i32
    %c0_i32_0 = arith.constant 0 : i32
    return %c0_i32, %arg0 : i32, i32
  }
  func.func @transform_1(%arg0: i32) -> (i32, i32) {
    %c0_i32 = arith.constant 0 : i32
    %c0_i32_0 = arith.constant 0 : i32
    %c0_i32_1 = arith.constant 0 : i32
    return %c0_i32, %c0_i32_0 : i32, i32
  }
  func.func @transform_2(%arg0: i32) -> (i32, i32) {
    %c0_i32 = arith.constant 0 : i32
    %c0_i32_0 = arith.constant 0 : i32
    %c0_i32_1 = arith.constant 0 : i32
    return %c0_i32, %c0_i32_0 : i32, i32
  }
  func.func @transform_3(%arg0: i32) -> (i32, i32) {
    %c0_i32 = arith.constant 0 : i32
    %c0_i32_0 = arith.constant 0 : i32
    return %c0_i32, %arg0 : i32, i32
  }
}

</mosaic_0001>

<bundles_post_ra>
// kernel: tile.1
= control target key start
LH: loop header
LB: loop body
LE: loop exit
PB: predicated region body
PF: predicated region fallthrough
CT: control target
= control target key end

     0   :  { %vm8_vm0 = vcmask 7168   ;;  %s27_s10 = smov 126   ;;  %s50_s0 = inlined_call_operand.vmem [shape: f32[2,3], index: 0, kind: input, shape index: {}]   ;;  %s51_s1 = inlined_call_operand.vmem [shape: f32[6,1], index: 1, kind: output, shape index: {}]  }
   0x1   :  { %v5_v0 = vld [vmem:[%s50_s0] sm:$0x3]  ;;  %s26_s0 = smov 127  }
   0x2   :  { %6 = vst [vmem:[#allocation0] sm:$0x3] %v5_v0 }
   0x9   :  { %v10_v1 = vld [vmem:[#allocation0] sm:$0x3]  }
   0xa   :  { %v7_v2 = vld [vmem:[#allocation0] sm:$0x3]   ;;  %11 = vrot.lane.b32.xlu0 %v10_v1, %s26_s0 }
   0xb   :  { %9 = vst.msk [vmem:[%s51_s1] ss:$3 sm:$0x3] %vm8_vm0, %v7_v2   ;;  %v16_v3 = vld [vmem:[#allocation0] sm:$0x3]  }
   0xe   :  { %17 = vrot.lane.b32.xlu0 %v16_v3, %s27_s10 }
  0x7c   :  { %v12_v4 = vpop.permute.xlu0 %11  }
  0x7d   :  { %22 = vst.msk [vmem:[%s51_s1 + $0x1] ss:$3 sm:$0x3] %vm8_vm0, %v12_v4  }
  0x80   :  { %v18_v5 = vpop.permute.xlu0 %17  }
  0x81   :  { %23 = vst.msk [vmem:[%s51_s1 + $0x2] ss:$3 sm:$0x3] %vm8_vm0, %v18_v5  }

// kernel: tile.14
= control target key start
LH: loop header
LB: loop body
LE: loop exit
PB: predicated region body
PF: predicated region fallthrough
CT: control target
= control target key end

     0   :  { %s22_s0 = inlined_call_operand.vmem [shape: f32[3], index: 0, kind: input, shape index: {}]   ;;  %s23_s1 = inlined_call_operand.vmem [shape: f32[2,3], index: 1, kind: output, shape index: {}]  }
   0x1   :  { %v4_v0 = vld [vmem:[%s22_s0] ss:$0 sm:$0xff] }
   0x2   :  { %5 = vst [vmem:[%s23_s1] sm:$0x3] %v4_v0 }

// kernel: preprocess.1
= control target key start
LH: loop header
LB: loop body
LE: loop exit
PB: predicated region body
PF: predicated region fallthrough
CT: control target
= control target key end

     0   :  { %v40_v0 = vmov 0   ;;  %s79_s1 = inlined_call_operand.vmem [shape: f32[6,1], index: 1, kind: input, shape index: {}]   ;;  %s80_s2 = inlined_call_operand.vmem [shape: f32[6,1], index: 2, kind: input, shape index: {}]   ;;  %s81_s0 = inlined_call_operand.vmem [shape: f32[6,256], index: 0, kind: input, shape index: {}]   ;;  %s82_s3 = inlined_call_operand.vmem [shape: f32[6,256], index: 3, kind: output, shape index: {}]  }
   0x1   :  { %39 = vset.pattern.permute.xlu0 %v40_v0  ;;  %v16_v1 = vld [vmem:[%s79_s1] sm:$0x3f]  ;;  %v15_v5 = vld [vmem:[%s81_s0 + $0x8] sm:$0x3f] }
   0x2   :  { %19 = vperm.xlu0 %39, %v16_v1   ;;  %v24_v2 = vld [vmem:[%s80_s2] sm:$0x3f] }
   0x3   :  { %v14_v4 = vld [vmem:[%s81_s0] sm:$0x3f] }
   0x6   :  { %27 = vperm.xlu0 %39, %v24_v2  }
  0x7d   :  { %v20_v3 = vpop.permute.xlu0 %19 }
  0x7e   :  { %v22_v6 = vmul.f32 %v20_v3, %v14_v4  ;;  %v23_v7 = vmul.f32 %v20_v3, %v15_v5 }
  0x81   :  { %v28_v8 = vpop.permute.xlu0 %27 }
  0x82   :  { %v30_v9 = vadd.f32 %v28_v8, %v22_v6  ;;  %v31_v10 = vadd.f32 %v28_v8, %v23_v7 }
  0x84   :  { %32 = vst [vmem:[%s82_s3] sm:$0x3f] %v30_v9  ;;  %33 = vst [vmem:[%s82_s3 + $0x8] sm:$0x3f] %v31_v10 }

</bundles_post_ra>
